<compile_context>
chip_gen: v6e
topology: v6e:2x2x1
jax: 0.10.0
libtpu: 0.0.40
codegen_flags: <defaults>
</compile_context>

<pallas_src>
import functools

import jax
import jax.numpy as jnp
from jax.experimental import pallas as pl
from jax.experimental.pallas import tpu as pltpu

FOLD = 8                      # batch rows folded into the lane axis
IN_F, HID, OUT_F = 10, 16, 1  # layer widths from the PyTorch module


def mlp_kernel(x_ref, w1_ref, b1_ref, w2_ref, b2_ref, w3_ref, b3_ref, o_ref):
    x = x_ref[...]                                                        # (TG, 80)

    # Layer 1: Linear(10, 16) + ReLU   (block-diag -> (TG, 128))
    h1 = jnp.dot(x, w1_ref[...], preferred_element_type=jnp.float32) + b1_ref[...]
    h1 = jnp.maximum(h1, 0.0)

    # Layer 2: Linear(16, 16) + ReLU   (genuine 128-wide MXU matmul)
    h2 = jnp.dot(h1, w2_ref[...], preferred_element_type=jnp.float32) + b2_ref[...]
    h2 = jnp.maximum(h2, 0.0)

    # Layer 3: Linear(16, 1) + Sigmoid (block-diag -> (TG, 8))
    z = jnp.dot(h2, w3_ref[...], preferred_element_type=jnp.float32) + b3_ref[...]
    o_ref[...] = jax.nn.sigmoid(z).astype(o_ref.dtype)


def _fold_params(params, fold=FOLD):
    """Block-diagonal weights / lane-tiled biases for the lane-folded layout."""
    def bd(w):   # (fin, fout) -> (fold*fin, fold*fout) block diagonal
        return jnp.kron(jnp.eye(fold, dtype=w.dtype), w)
    def tb(b):   # (1, fout) -> (1, fold*fout)
        return jnp.tile(b, (1, fold))
    return (bd(params["w1"]), tb(params["b1"]),
            bd(params["w2"]), tb(params["b2"]),
            bd(params["w3"]), tb(params["b3"]))


@functools.partial(jax.jit, static_argnames=("tile_g",))
def sequential_nn_forward(x, params, *, tile_g=1024):
    """x: (B, 10) float32.  params: dict of (in,out)-layout weights and (1,out) biases."""
    B = x.shape[0]

    # Fold 8 batch rows into the lane axis; pad so the grid tiles evenly.
    G = pl.cdiv(B, FOLD)                     # folded groups needed
    G = max(8, pl.cdiv(G, 8) * 8)            # sublane-align the group count
    tile_g = max(8, (min(tile_g, G) // 8) * 8)   # tile = full G or a multiple of 8
    G = pl.cdiv(G, tile_g) * tile_g          # whole number of grid steps
    B_pad = G * FOLD
    if B_pad != B:
        x = jnp.pad(x, ((0, B_pad - B), (0, 0)))
    xf = x.reshape(G, FOLD * IN_F)           # (G, 80): sample 8g+j -> lanes [10j, 10j+10)

    w1, b1, w2, b2, w3, b3 = _fold_params(params)

    # Weights/biases: constant index_map -> resident in VMEM, DMA'd once.
    def resident(a):
        return pl.BlockSpec(a.shape, lambda i: (0,) * a.ndim)

    out = pl.pallas_call(
        mlp_kernel,
        out_shape=jax.ShapeDtypeStruct((G, FOLD * OUT_F), jnp.float32),
        grid=(G // tile_g,),
        in_specs=[
            pl.BlockSpec((tile_g, FOLD * IN_F), lambda i: (i, 0)),
            resident(w1), resident(b1),
            resident(w2), resident(b2),
            resident(w3), resident(b3),
        ],
        out_specs=pl.BlockSpec((tile_g, FOLD * OUT_F), lambda i: (i, 0)),
        compiler_params=pltpu.CompilerParams(
            dimension_semantics=("parallel",)),   # v7x: shard batch across 2 TCs
    )(xf, w1, b1, w2, b2, w3, b3)

    return out.reshape(B_pad, OUT_F)[:B]


def init_params(key):
    """Deterministic init mirroring PyTorch Linear shapes.
    PyTorch stores weight as (out, in); we keep the transposed (in, out) form."""
    k1, k2, k3, k4, k5, k6 = jax.random.split(key, 6)

    def linear(kw, kb, fan_in, fan_out):
        bound = 1.0 / jnp.sqrt(fan_in)
        w = jax.random.uniform(kw, (fan_in, fan_out), jnp.float32, -bound, bound)
        b = jax.random.uniform(kb, (1, fan_out), jnp.float32, -bound, bound)
        return w, b

    w1, b1 = linear(k1, k2, IN_F, HID)
    w2, b2 = linear(k3, k4, HID, HID)
    w3, b3 = linear(k5, k6, HID, OUT_F)
    return {"w1": w1, "b1": b1, "w2": w2, "b2": b2, "w3": w3, "b3": b3}


def reference_forward(x, p):
    h1 = jnp.maximum(x @ p["w1"] + p["b1"], 0.0)
    h2 = jnp.maximum(h1 @ p["w2"] + p["b2"], 0.0)
    return jax.nn.sigmoid(h2 @ p["w3"] + p["b3"])


if __name__ == "__main__":
    key = jax.random.PRNGKey(0)
    kx1, kx2, kp = jax.random.split(key, 3)

    params = init_params(kp)

    # Small batch: exercises fold + padding, single grid step.
    x1 = jax.random.normal(kx1, (64, IN_F), jnp.float32)
    out1 = jax.block_until_ready(sequential_nn_forward(x1, params))
    ref1 = reference_forward(x1, params)
    assert out1.shape == (64, 1), out1.shape
    assert jnp.allclose(out1, ref1, atol=2e-5, rtol=2e-5), "mismatch vs reference (small batch)"

    # Larger batch with a small tile: exercises the multi-step pipelined batch grid.
    x2 = jax.random.normal(kx2, (2000, IN_F), jnp.float32)
    out2 = jax.block_until_ready(sequential_nn_forward(x2, params, tile_g=64))
    ref2 = reference_forward(x2, params)
    assert out2.shape == (2000, 1), out2.shape
    assert jnp.allclose(out2, ref2, atol=2e-5, rtol=2e-5), "mismatch vs reference (gridded batch)"

    print("KERNEL_OK")
</pallas_src>

<mosaic_0001>
module attributes {stable_mosaic.version = 11 : i64} {
  func.func @mlp_kernel(%arg0: i32, %arg1: memref<8x80xf32, #tpu.memory_space<vmem>>, %arg2: memref<80x128xf32, #tpu.memory_space<vmem>>, %arg3: memref<1x128xf32, #tpu.memory_space<vmem>>, %arg4: memref<128x128xf32, #tpu.memory_space<vmem>>, %arg5: memref<1x128xf32, #tpu.memory_space<vmem>>, %arg6: memref<128x8xf32, #tpu.memory_space<vmem>>, %arg7: memref<1x8xf32, #tpu.memory_space<vmem>>, %arg8: memref<8x8xf32, #tpu.memory_space<vmem>>) attributes {dimension_semantics = [#tpu.dimension_semantics<parallel>], iteration_bounds = array<i64: 1>, scalar_prefetch = 0 : i64, scratch_operands = 0 : i64, tpu.core_type = #tpu.core_type<tc>, window_params = [{transform_indices = @transform_0, window_bounds = array<i64: 8, 80>}, {pipeline_mode = #tpu.pipeline_mode<synchronous>, transform_indices = @transform_1, window_bounds = array<i64: 80, 128>}, {pipeline_mode = #tpu.pipeline_mode<synchronous>, transform_indices = @transform_2, window_bounds = array<i64: 1, 128>}, {pipeline_mode = #tpu.pipeline_mode<synchronous>, transform_indices = @transform_3, window_bounds = array<i64: 128, 128>}, {pipeline_mode = #tpu.pipeline_mode<synchronous>, transform_indices = @transform_4, window_bounds = array<i64: 1, 128>}, {pipeline_mode = #tpu.pipeline_mode<synchronous>, transform_indices = @transform_5, window_bounds = array<i64: 128, 8>}, {pipeline_mode = #tpu.pipeline_mode<synchronous>, transform_indices = @transform_6, window_bounds = array<i64: 1, 8>}, {transform_indices = @transform_7, window_bounds = array<i64: 8, 8>}]} {
    %c0 = arith.constant 0 : index
    %c0_0 = arith.constant 0 : index
    %0 = vector.load %arg1[%c0, %c0_0] : memref<8x80xf32, #tpu.memory_space<vmem>>, vector<8x80xf32>
    %c0_1 = arith.constant 0 : index
    %c0_2 = arith.constant 0 : index
    %1 = vector.load %arg2[%c0_1, %c0_2] : memref<80x128xf32, #tpu.memory_space<vmem>>, vector<80x128xf32>
    %cst = arith.constant dense<0.000000e+00> : vector<8x128xf32>
    %2 = tpu.matmul %0, %1, %cst {dimension_numbers = #tpu.dot_dimension_numbers<[1], [0], [0], [1], [0, 0, 1, 1], [], []>} : vector<8x80xf32>, vector<80x128xf32>, vector<8x128xf32> -> vector<8x128xf32>
    %c0_3 = arith.constant 0 : index
    %c0_4 = arith.constant 0 : index
    %3 = vector.load %arg3[%c0_3, %c0_4] : memref<1x128xf32, #tpu.memory_space<vmem>>, vector<1x128xf32>
    %4 = vector.broadcast %3 : vector<1x128xf32> to vector<8x128xf32>
    %5 = arith.addf %2, %4 : vector<8x128xf32>
    %cst_5 = arith.constant 0.000000e+00 : f32
    %6 = vector.broadcast %cst_5 : f32 to vector<8x128xf32>
    %7 = arith.maximumf %5, %6 : vector<8x128xf32>
    %c0_6 = arith.constant 0 : index
    %c0_7 = arith.constant 0 : index
    %8 = vector.load %arg4[%c0_6, %c0_7] : memref<128x128xf32, #tpu.memory_space<vmem>>, vector<128x128xf32>
    %cst_8 = arith.constant dense<0.000000e+00> : vector<8x128xf32>
    %9 = tpu.matmul %7, %8, %cst_8 {dimension_numbers = #tpu.dot_dimension_numbers<[1], [0], [0], [1], [0, 0, 1, 1], [], []>} : vector<8x128xf32>, vector<128x128xf32>, vector<8x128xf32> -> vector<8x128xf32>
    %c0_9 = arith.constant 0 : index
    %c0_10 = arith.constant 0 : index
    %10 = vector.load %arg5[%c0_9, %c0_10] : memref<1x128xf32, #tpu.memory_space<vmem>>, vector<1x128xf32>
    %11 = vector.broadcast %10 : vector<1x128xf32> to vector<8x128xf32>
    %12 = arith.addf %9, %11 : vector<8x128xf32>
    %cst_11 = arith.constant 0.000000e+00 : f32
    %13 = vector.broadcast %cst_11 : f32 to vector<8x128xf32>
    %14 = arith.maximumf %12, %13 : vector<8x128xf32>
    %c0_12 = arith.constant 0 : index
    %c0_13 = arith.constant 0 : index
    %15 = vector.load %arg6[%c0_12, %c0_13] : memref<128x8xf32, #tpu.memory_space<vmem>>, vector<128x8xf32>
    %cst_14 = arith.constant dense<0.000000e+00> : vector<8x8xf32>
    %16 = tpu.matmul %14, %15, %cst_14 {dimension_numbers = #tpu.dot_dimension_numbers<[1], [0], [0], [1], [0, 0, 1, 1], [], []>} : vector<8x128xf32>, vector<128x8xf32>, vector<8x8xf32> -> vector<8x8xf32>
    %c0_15 = arith.constant 0 : index
    %c0_16 = arith.constant 0 : index
    %17 = vector.load %arg7[%c0_15, %c0_16] : memref<1x8xf32, #tpu.memory_space<vmem>>, vector<1x8xf32>
    %18 = vector.broadcast %17 : vector<1x8xf32> to vector<8x8xf32>
    %19 = arith.addf %16, %18 : vector<8x8xf32>
    %20 = arith.negf %19 : vector<8x8xf32>
    %21 = math.exp %20 : vector<8x8xf32>
    %cst_17 = arith.constant 1.000000e+00 : f32
    %22 = vector.broadcast %cst_17 : f32 to vector<8x8xf32>
    %23 = arith.addf %22, %21 : vector<8x8xf32>
    %24 = arith.divf %22, %23 : vector<8x8xf32>
    %c0_18 = arith.constant 0 : index
    %c0_19 = arith.constant 0 : index
    %25 = vector.load %arg8[%c0_18, %c0_19] : memref<8x8xf32, #tpu.memory_space<vmem>>, vector<8x8xf32>
    tpu.vector_store %arg8[%c0_18, %c0_19], %24 {strides = array<i32>} : memref<8x8xf32, #tpu.memory_space<vmem>>, vector<8x8xf32>,
    return
  }
  func.func @transform_0(%arg0: i32) -> (i32, i32) {
    %c0_i32 = arith.constant 0 : i32
    %c0_i32_0 = arith.constant 0 : i32
    return %arg0, %c0_i32 : i32, i32
  }
  func.func @transform_1(%arg0: i32) -> (i32, i32) {
    %c0_i32 = arith.constant 0 : i32
    %c0_i32_0 = arith.constant 0 : i32
    %c0_i32_1 = arith.constant 0 : i32
    return %c0_i32, %c0_i32_0 : i32, i32
  }
  func.func @transform_2(%arg0: i32) -> (i32, i32) {
    %c0_i32 = arith.constant 0 : i32
    %c0_i32_0 = arith.constant 0 : i32
    %c0_i32_1 = arith.constant 0 : i32
    return %c0_i32, %c0_i32_0 : i32, i32
  }
  func.func @transform_3(%arg0: i32) -> (i32, i32) {
    %c0_i32 = arith.constant 0 : i32
    %c0_i32_0 = arith.constant 0 : i32
    %c0_i32_1 = arith.constant 0 : i32
    return %c0_i32, %c0_i32_0 : i32, i32
  }
  func.func @transform_4(%arg0: i32) -> (i32, i32) {
    %c0_i32 = arith.constant 0 : i32
    %c0_i32_0 = arith.constant 0 : i32
    %c0_i32_1 = arith.constant 0 : i32
    return %c0_i32, %c0_i32_0 : i32, i32
  }
  func.func @transform_5(%arg0: i32) -> (i32, i32) {
    %c0_i32 = arith.constant 0 : i32
    %c0_i32_0 = arith.constant 0 : i32
    %c0_i32_1 = arith.constant 0 : i32
    return %c0_i32, %c0_i32_0 : i32, i32
  }
  func.func @transform_6(%arg0: i32) -> (i32, i32) {
    %c0_i32 = arith.constant 0 : i32
    %c0_i32_0 = arith.constant 0 : i32
    %c0_i32_1 = arith.constant 0 : i32
    return %c0_i32, %c0_i32_0 : i32, i32
  }
  func.func @transform_7(%arg0: i32) -> (i32, i32) {
    %c0_i32 = arith.constant 0 : i32
    %c0_i32_0 = arith.constant 0 : i32
    return %arg0, %c0_i32 : i32, i32
  }
}

</mosaic_0001>

<bundles_post_ra>
// kernel: sequential_nn_forward.1
= control target key start
LH: loop header
LB: loop body
LE: loop exit
PB: predicated region body
PF: predicated region fallthrough
CT: control target
= control target key end

     0   :  { %v467_v0 = vmov 0.0   ;;  %vm468_vm0 = vmmov 0   ;;  %vm44_vm1 = vcmask 654336   ;;  %vm312_vm2 = vcmask 64512   ;;  %s698_s1 = inlined_call_operand.vmem [shape: f32[80,128], index: 1, kind: input, shape index: {}]   ;;  %s699_s3 = inlined_call_operand.vmem [shape: f32[128,128], index: 3, kind: input, shape index: {}]   ;;  %s700_s0 = inlined_call_operand.vmem [shape: f32[8,80], index: 0, kind: input, shape index: {}]   ;;  %s701_s5 = inlined_call_operand.vmem [shape: f32[128,8], index: 5, kind: input, shape index: {}]   ;;  %s702_s2 = inlined_call_operand.vmem [shape: f32[1,128], index: 2, kind: input, shape index: {}]   ;;  %s703_s4 = inlined_call_operand.vmem [shape: f32[1,128], index: 4, kind: input, shape index: {}]   ;;  %s704_s6 = inlined_call_operand.vmem [shape: f32[1,8], index: 6, kind: input, shape index: {}]   ;;  %s705_s7 = inlined_call_operand.vmem [shape: f32[8,8], index: 7, kind: output, shape index: {}]  }
   0x1   :  { %368 = vmatprep.subr.mxu0 %v467_v0  ;;  %v36_v1 = vld [vmem:[%s698_s1 + $0x48] sm:$0xff]  ;;  %v35_v2 = vld [vmem:[%s698_s1 + $0x40] sm:$0xff]  ;;  %388 = vmatprep.mubr.msk.f32.mxu0 %vm468_vm0, %v467_v0  ;;  %v34_v3 = vld [vmem:[%s698_s1 + $0x38] sm:$0xff] }
   0x2   :  { %369 = vmatpush3.msra.mxu0 %v36_v1  ;;  %391 = vmatprep.subr.mxu1 %v467_v0  ;;  %v134_v4 = vld [vmem:[%s699_s3 + $0x78] sm:$0xff]  ;;  %v33_v5 = vld [vmem:[%s698_s1 + $0x30] sm:$0xff]  ;;  %v132_v7 = vld [vmem:[%s699_s3 + $0x68] sm:$0xff] }
   0x3   :  { %370 = vmatprep.subr.mxu0 %v467_v0  ;;  %423 = vmatprep.mubr.msk.f32.mxu1 %vm468_vm0, %v467_v0  ;;  %v133_v6 = vld [vmem:[%s699_s3 + $0x70] sm:$0xff]  ;;  %v32_v8 = vld [vmem:[%s698_s1 + $0x28] sm:$0xff]  ;;  %v131_v9 = vld [vmem:[%s699_s3 + $0x60] sm:$0xff] }
   0x4   :  { %371 = vmatpush3.msra.mxu0 %v35_v2  ;;  %392 = vmatpush3.msra.mxu1 %v134_v4  ;;  %v31_v10 = vld [vmem:[%s698_s1 + $0x20] sm:$0xff]  ;;  %v130_v11 = vld [vmem:[%s699_s3 + $0x58] sm:$0xff]  ;;  %v129_v13 = vld [vmem:[%s699_s3 + $0x50] sm:$0xff] }
   0x5   :  { %372 = vmatprep.subr.mxu0 %v467_v0  ;;  %393 = vmatprep.subr.mxu1 %v467_v0  ;;  %v30_v12 = vld [vmem:[%s698_s1 + $0x18] sm:$0xff]  ;;  %v29_v14 = vld [vmem:[%s698_s1 + $0x10] sm:$0xff]  ;;  %v128_v15 = vld [vmem:[%s699_s3 + $0x48] sm:$0xff] }
   0x6   :  { %373 = vmatpush3.msra.mxu0 %v34_v3  ;;  %394 = vmatpush3.msra.mxu1 %v133_v6  ;;  %v28_v16 = vld [vmem:[%s698_s1 + $0x8] sm:$0xff]  ;;  %v127_v17 = vld [vmem:[%s699_s3 + $0x40] sm:$0xff]  ;;  %v126_v20 = vld [vmem:[%s699_s3 + $0x38] sm:$0xff] }
   0x7   :  { %374 = vmatprep.subr.mxu0 %v467_v0  ;;  %395 = vmatprep.subr.mxu1 %v467_v0  ;;  %v27_v18 = vld [vmem:[%s698_s1] sm:$0xff]  ;;  %v125_v21 = vld [vmem:[%s699_s3 + $0x30] sm:$0xff]  ;;  %v124_v22 = vld [vmem:[%s699_s3 + $0x28] sm:$0xff] }
   0x8   :  { %375 = vmatpush3.msra.mxu0 %v33_v5  ;;  %396 = vmatpush3.msra.mxu1 %v132_v7  ;;  %v26_v19 = vld [vmem:[%s700_s0] sm:$0xff]  ;;  %v122_v24 = vld [vmem:[%s699_s3 + $0x18] sm:$0xff]  ;;  %v121_v25 = vld [vmem:[%s699_s3 + $0x10] sm:$0xff] }
   0x9   :  { %376 = vmatprep.subr.mxu0 %v467_v0  ;;  %397 = vmatprep.subr.mxu1 %v467_v0  ;;  %v123_v23 = vld [vmem:[%s699_s3 + $0x20] sm:$0xff]  ;;  %v120_v26 = vld [vmem:[%s699_s3 + $0x8] sm:$0xff]  ;;  %v228_v28 = vld [vmem:[%s701_s5 + $0x78] sm:$0xff] }
   0xa   :  { %377 = vmatpush3.msra.mxu0 %v32_v8  ;;  %398 = vmatpush3.msra.mxu1 %v131_v9  ;;  %v119_v27 = vld [vmem:[%s699_s3] sm:$0xff]  ;;  %v227_v29 = vld [vmem:[%s701_s5 + $0x70] sm:$0xff]  ;;  %v226_v30 = vld [vmem:[%s701_s5 + $0x68] sm:$0xff] }
   0xb   :  { %378 = vmatprep.subr.mxu0 %v467_v0  ;;  %399 = vmatprep.subr.mxu1 %v467_v0  ;;  %v225_v31 = vld [vmem:[%s701_s5 + $0x60] sm:$0xff]  ;;  %v224_v32 = vld [vmem:[%s701_s5 + $0x58] sm:$0xff]  ;;  %v223_v33 = vld [vmem:[%s701_s5 + $0x50] sm:$0xff] }
   0xc   :  { %379 = vmatpush3.msra.mxu0 %v31_v10  ;;  %400 = vmatpush3.msra.mxu1 %v130_v11  ;;  %v222_v34 = vld [vmem:[%s701_s5 + $0x48] sm:$0xff]  ;;  %v221_v35 = vld [vmem:[%s701_s5 + $0x40] sm:$0xff]  ;;  %v220_v36 = vld [vmem:[%s701_s5 + $0x38] sm:$0xff] }
   0xd   :  { %380 = vmatprep.subr.mxu0 %v467_v0  ;;  %401 = vmatprep.subr.mxu1 %v467_v0  ;;  %v219_v37 = vld [vmem:[%s701_s5 + $0x30] sm:$0xff]  ;;  %v218_v38 = vld [vmem:[%s701_s5 + $0x28] sm:$0xff]  ;;  %v217_v39 = vld [vmem:[%s701_s5 + $0x20] sm:$0xff] }
   0xe   :  { %381 = vmatpush3.msra.mxu0 %v30_v12  ;;  %402 = vmatpush3.msra.mxu1 %v129_v13  ;;  %v216_v40 = vld [vmem:[%s701_s5 + $0x18] sm:$0xff]  ;;  %v318_v41 = vld [vmem:[%s702_s2] ss:$0 sm:$0xff]  ;;  %v215_v46 = vld [vmem:[%s701_s5 + $0x10] sm:$0xff] }
   0xf   :  { %382 = vmatprep.subr.mxu0 %v467_v0  ;;  %403 = vmatprep.subr.mxu1 %v467_v0  ;;  %v214_v47 = vld [vmem:[%s701_s5 + $0x8] sm:$0xff]  ;;  %v213_v48 = vld [vmem:[%s701_s5] sm:$0xff] }
  0x10   :  { %383 = vmatpush3.msra.mxu0 %v29_v14  ;;  %404 = vmatpush3.msra.mxu1 %v128_v15  ;;  %v320_v49 = vld [vmem:[%s703_s4] ss:$0 sm:$0xff] }
  0x11   :  { %384 = vmatprep.subr.mxu0 %v467_v0  ;;  %405 = vmatprep.subr.mxu1 %v467_v0  ;;  %v321_v54 = vld [vmem:[%s704_s6] ss:$0 sm:$0xff] }
  0x12   :  { %385 = vmatpush3.msra.mxu0 %v28_v16  ;;  %406 = vmatpush3.msra.mxu1 %v127_v17 }
  0x13   :  { %386 = vmatprep.subr.mxu0 %v467_v0  ;;  %407 = vmatprep.subr.mxu1 %v467_v0 }
  0x14   :  { %387 = vmatpush3.msra.mxu0 %v27_v18  ;;  %408 = vmatpush3.msra.mxu1 %v126_v20 }
  0x15   :  { %389 = vmatmul.mubr.msk.f32.vlgmr.msra.gmra.mxu0 %vm44_vm1, %v26_v19  ;;  %409 = vmatprep.subr.mxu1 %v467_v0 }
  0x16   :  { %426 = vmatprep.subr.mxu0 %v467_v0  ;;  %410 = vmatpush3.msra.mxu1 %v125_v21 }
  0x17   :  { %458 = vmatprep.mubr.msk.f32.mxu0 %vm468_vm0, %v467_v0  ;;  %411 = vmatprep.subr.mxu1 %v467_v0 }
  0x18   :  { %412 = vmatpush3.msra.mxu1 %v124_v22  ;;  %427 = vmatpush3.msra.mxu0 %v228_v28 }
  0x19   :  { %413 = vmatprep.subr.mxu1 %v467_v0  ;;  %428 = vmatprep.subr.mxu0 %v467_v0 }
  0x1a   :  { %414 = vmatpush3.msra.mxu1 %v123_v23  ;;  %429 = vmatpush3.msra.mxu0 %v227_v29 }
  0x1b   :  { %415 = vmatprep.subr.mxu1 %v467_v0  ;;  %430 = vmatprep.subr.mxu0 %v467_v0 }
  0x1c   :  { %416 = vmatpush3.msra.mxu1 %v122_v24  ;;  %431 = vmatpush3.msra.mxu0 %v226_v30 }
  0x1d   :  { %417 = vmatprep.subr.mxu1 %v467_v0  ;;  %432 = vmatprep.subr.mxu0 %v467_v0 }
  0x1e   :  { %418 = vmatpush3.msra.mxu1 %v121_v25  ;;  %433 = vmatpush3.msra.mxu0 %v225_v31 }
  0x1f   :  { %419 = vmatprep.subr.mxu1 %v467_v0  ;;  %434 = vmatprep.subr.mxu0 %v467_v0 }
  0x20   :  { %420 = vmatpush3.msra.mxu1 %v120_v26  ;;  %435 = vmatpush3.msra.mxu0 %v224_v32 }
  0x21   :  { %421 = vmatprep.subr.mxu1 %v467_v0  ;;  %436 = vmatprep.subr.mxu0 %v467_v0 }
  0x22   :  { %422 = vmatpush3.msra.mxu1 %v119_v27  ;;  %437 = vmatpush3.msra.mxu0 %v223_v33 }
  0x23   :  { %438 = vmatprep.subr.mxu0 %v467_v0 }
  0x24   :  { %439 = vmatpush3.msra.mxu0 %v222_v34 }
  0x25   :  { %440 = vmatprep.subr.mxu0 %v467_v0 }
  0x26   :  { %441 = vmatpush3.msra.mxu0 %v221_v35 }
  0x27   :  { %442 = vmatprep.subr.mxu0 %v467_v0 }
  0x28   :  { %443 = vmatpush3.msra.mxu0 %v220_v36 }
  0x29   :  { %444 = vmatprep.subr.mxu0 %v467_v0 }
  0x2a   :  { %445 = vmatpush3.msra.mxu0 %v219_v37 }
  0x2b   :  { %446 = vmatprep.subr.mxu0 %v467_v0 }
  0x2c   :  { %447 = vmatpush3.msra.mxu0 %v218_v38 }
  0x2d   :  { %448 = vmatprep.subr.mxu0 %v467_v0 }
  0x2e   :  { %449 = vmatpush3.msra.mxu0 %v217_v39 }
  0x2f   :  { %450 = vmatprep.subr.mxu0 %v467_v0 }
  0x30   :  { %451 = vmatpush3.msra.mxu0 %v216_v40 }
  0x31   :  { %452 = vmatprep.subr.mxu0 %v467_v0 }
  0x32   :  { %453 = vmatpush3.msra.mxu0 %v215_v46 }
  0x33   :  { %454 = vmatprep.subr.mxu0 %v467_v0 }
  0x34   :  { %455 = vmatpush3.msra.mxu0 %v214_v47 }
  0x35   :  { %456 = vmatprep.subr.mxu0 %v467_v0 }
  0x36   :  { %457 = vmatpush3.msra.mxu0 %v213_v48 }
  0xd5   :  { %v114_v42 = vpop.f32.mrf.mxu0 }
  0xd6   :  { %v115_v43 = vadd.f32 %v318_v41, %v114_v42 }
  0xd7   :  { %v390_v44 = vpop.f32.mrf.mxu0 }
  0xd8   :  { %v118_v45 = vmax.f32 %v115_v43, 0.0 }
  0xda   :  { %424 = vmatmul.mubr.f32.vlgmr.msra.gmra.mxu1 %v118_v45 }
 0x19a   :  { %v208_v50 = vpop.f32.mrf.mxu1 }
 0x19b   :  { %v209_v51 = vadd.f32 %v320_v49, %v208_v50 }
 0x19c   :  { %v425_v52 = vpop.f32.mrf.mxu1 }
 0x19d   :  { %v212_v53 = vmax.f32 %v209_v51, 0.0 }
 0x19f   :  { %459 = vmatmul.mubr.f32.vlgmr.msra.gmra.mxu0 %v212_v53 }
 0x25f   :  { %v302_v55 = vpop.f32.mrf.mxu0 }
 0x260   :  { %v303_v56 = vadd.f32 %v321_v54, %v302_v55 }
 0x261   :  { %v460_v57 = vpop.f32.mrf.mxu0 }
 0x262   :  { %v322_v58 = vmul.f32 -1.442695, %v303_v56 }
 0x264   :  { %463 = vpow2.f32 %v322_v58 }
 0x271   :  { %v464_v59 = vpop.eup %463 }
 0x272   :  { %v309_v60 = vadd.f32 1.0, %v464_v59 }
 0x274   :  { %465 = vrcp.f32 %v309_v60 }
 0x281   :  { %v466_v61 = vpop.eup %465 }
 0x282   :  { %313 = vst.msk [vmem:[%s705_s7] sm:$0xff] %vm312_vm2, %v466_v61 }

</bundles_post_ra>
